<compile_context>
chip_gen: v6e
topology: v6e:2x2x1
jax: 0.10.0
libtpu: 0.0.40
codegen_flags: <defaults>
</compile_context>

<pallas_src>
import functools

import jax
import jax.numpy as jnp
from jax.experimental import pallas as pl
from jax.experimental.pallas import tpu as pltpu

EPSILON = 1e-6
REGION_WEIGHT = 1.0
CONTOUR_WEIGHT = 1.0


def _active_contour_kernel(mask_ref, x_ref, y_ref, contour_ref, region_ref, *, W, H):
    """One row-tile of the flattened [B*C, W*H] inputs.

    Writes per-lane row-sums (shape (1, 1, W*H)) of the contour and region
    terms into this tile's output blocks.
    """
    wh = W * H
    x = x_ref[...].astype(jnp.float32)
    y = y_ref[...].astype(jnp.float32)
    mask = mask_ref[...]                       # (1, wh) f32, grid-invariant

    # ---- region term (fused): y*(x-1)^2 + (1-y)*x^2 == x^2 - 2xy + y ----
    region_vals = x * x - 2.0 * x * y + y

    # ---- contour term ----
    # Flat index p = w*H + h; roll(x, wh - k) along lanes gives x[p + k].
    # Rolls never mix rows, and wrapped entries are masked out below.
    x_w1 = pltpu.roll(x, shift=(wh - H) % wh, axis=1)        # x[w+1, h]
    x_w2 = pltpu.roll(x, shift=(wh - 2 * H) % wh, axis=1)    # x[w+2, h]
    x_h1 = pltpu.roll(x, shift=(wh - 1) % wh, axis=1)        # x[w, h+1]
    x_h2 = pltpu.roll(x, shift=(wh - 2) % wh, axis=1)        # x[w, h+2]

    hg2 = (x_w2 - x_w1) ** 2            # (x[w+2,h] - x[w+1,h])^2
    vg2 = (x_h2 - x_h1) ** 2            # (x[w,h+2] - x[w,h+1])^2
    # hg2 + vg2 >= 0, so the reference's abs() is redundant; sqrt is EUP work.
    contour_vals = jnp.sqrt(hg2 + vg2 + EPSILON) * mask

    # Sublane (row) reductions only: mostly VPU vreg adds + one small XLU pass.
    contour_ref[...] = jnp.sum(contour_vals, axis=0, keepdims=True)[None]
    region_ref[...] = jnp.sum(region_vals, axis=0, keepdims=True)[None]


def _vmem_capacity_bytes():
    try:
        info = pltpu.get_tpu_info()
        cap = getattr(info, "vmem_capacity_bytes", None)
        if cap:
            return int(cap)
    except Exception:
        pass
    return 64 * 1024 * 1024   # conservative (v7x per-TC) fallback


def _plan_tiles(bc, wh, itemsize):
    """Pick (tile_rows, num_tiles, vmem_limit_bytes), generation-aware."""
    vmem_cap = _vmem_capacity_bytes()
    # Live VMEM per tile row: 2 inputs x 2 pipeline buffers (input dtype) plus
    # ~8 tile-sized f32 temporaries (f32 casts, 4 rolled copies, hg2/vg2,
    # masked contour values, region values).
    per_row_live = wh * (2 * 2 * itemsize + 8 * 4)
    per_row_block = wh * itemsize
    headroom = 12 << 20                         # Mosaic internal scratch etc.
    budget = max(16 << 20, vmem_cap - headroom)
    # Per-input-block cap: small on v7x (64 MiB VMEM), larger on v5e/v6e (128).
    block_cap = (3 << 20) if vmem_cap <= (64 << 20) else (8 << 20)
    max_rows = min(budget // per_row_live, block_cap // per_row_block)
    max_rows = max(8, (int(max_rows) // 8) * 8)
    tile_rows = int(min(max_rows, pl.cdiv(bc, 8) * 8))
    num_tiles = int(pl.cdiv(bc, tile_rows))
    needed = (2 * 2 * tile_rows * wh * itemsize     # pipelined input blocks
              + 8 * tile_rows * wh * 4              # in-body f32 temporaries
              + 4 * wh * 4 + (2 << 20))             # mask + outputs + slack
    vmem_limit = int(min(max(vmem_cap - (8 << 20), 16 << 20),
                         max(32 << 20, needed)))
    return tile_rows, num_tiles, vmem_limit


def active_contour(x, y):
    """x, y: [B, C, W, H] arrays -> scalar loss (reduction='mean').

    The kernel is HBM-bandwidth-bound on v5e/v6e: feeding bf16 x/y roughly
    halves input traffic; accumulation is in f32 either way.
    """
    assert x.shape == y.shape and x.ndim == 4
    B, C, W, H = x.shape
    assert W >= 3 and H >= 3, "ActiveContour needs W >= 3 and H >= 3"
    bc, wh = B * C, W * H

    # Lane-dense layout: [B, C, W, H] -> [B*C, W*H] (contiguous reshape, free).
    # TODO(synk): for very large planes (single image row > a few MiB) add a
    # second grid axis tiling the flattened lane axis in 128-multiples with a
    # 2*H halo so the per-generation block budgets above still apply.
    x2 = x.reshape(bc, wh)
    y2 = y.reshape(bc, wh)
    itemsize = x2.dtype.itemsize

    tile_rows, num_tiles, vmem_limit = _plan_tiles(bc, wh, itemsize)
    bc_padded = num_tiles * tile_rows
    pad_rows = bc_padded - bc
    if pad_rows:
        # Zero rows contribute exactly (W-2)*(H-2)*sqrt(EPSILON) each to the
        # contour sum and 0 to the region sum; corrected analytically below.
        x2 = jnp.pad(x2, ((0, pad_rows), (0, 0)))
        y2 = jnp.pad(y2, ((0, pad_rows), (0, 0)))

    # Grid-invariant interior-window mask (w < W-2, h < H-2), hoisted out of
    # the kernel so no per-tile iota / div / mod is needed.
    lane = jnp.arange(wh, dtype=jnp.int32)
    w_idx = lane // H
    h_idx = lane - w_idx * H
    mask = ((w_idx < W - 2) & (h_idx < H - 2)).astype(jnp.float32).reshape(1, wh)

    kernel = functools.partial(_active_contour_kernel, W=W, H=H)

    cost = pl.CostEstimate(
        flops=int(16 * bc_padded * wh),
        transcendentals=int(bc_padded * wh),
        bytes_accessed=int(2 * bc_padded * wh * itemsize + wh * 4
                           + 2 * num_tiles * wh * 4),
    )

    contour_partials, region_partials = pl.pallas_call(
        kernel,
        out_shape=(jax.ShapeDtypeStruct((num_tiles, 1, wh), jnp.float32),
                   jax.ShapeDtypeStruct((num_tiles, 1, wh), jnp.float32)),
        grid=(num_tiles,),
        in_specs=[
            pl.BlockSpec((1, wh), lambda i: (0, 0)),           # mask (resident)
            pl.BlockSpec((tile_rows, wh), lambda i: (i, 0)),   # x tile
            pl.BlockSpec((tile_rows, wh), lambda i: (i, 0)),   # y tile
        ],
        out_specs=(
            pl.BlockSpec((1, 1, wh), lambda i: (i, 0, 0)),
            pl.BlockSpec((1, 1, wh), lambda i: (i, 0, 0)),
        ),
        compiler_params=pltpu.CompilerParams(
            # Blocked per-tile outputs (no shared SMEM scalar) => the row-tile
            # axis can shard across both TensorCores on v7x.
            dimension_semantics=("parallel",),
            vmem_limit_bytes=vmem_limit,
        ),
        cost_estimate=cost,
    )(mask, x2, y2)

    # Finalize once with the *global* element counts and remove the exact
    # contribution of any zero-padded rows.
    contour_sum = jnp.sum(contour_partials)
    region_sum = jnp.sum(region_partials)
    if pad_rows:
        pad_cell = float(jnp.sqrt(jnp.asarray(EPSILON, jnp.float32)))
        contour_sum = contour_sum - pad_rows * (W - 2) * (H - 2) * pad_cell
    n_contour = float(bc * (W - 2) * (H - 2))
    n_region = float(bc * wh)
    return (CONTOUR_WEIGHT * contour_sum * (1.0 / n_contour)
            + REGION_WEIGHT * region_sum * (1.0 / n_region))


def active_contour_ref(x, y):
    """Pure-JAX reference mirroring the PyTorch module (reduction='mean')."""
    x = x.astype(jnp.float32)
    y = y.astype(jnp.float32)
    hg = x[:, :, 1:, :] - x[:, :, :-1, :]
    vg = x[:, :, :, 1:] - x[:, :, :, :-1]
    hg = hg[:, :, 1:, :-2] ** 2
    vg = vg[:, :, :-2, 1:] ** 2
    contour = jnp.mean(jnp.sqrt(jnp.abs(hg + vg) + EPSILON))
    inner = jnp.mean(y * (x - 1.0) ** 2)
    outer = jnp.mean((1.0 - y) * x ** 2)
    return CONTOUR_WEIGHT * contour + REGION_WEIGHT * (inner + outer)


# TODO(synk): the 5-D volumetric path ([B,C,Z,W,H]), evolution=True (Scalar
# wrapper) and reduction='sum' variants of the original module are not
# implemented here; only the 4-D, reduction='mean' forward is covered.

if __name__ == "__main__":
    key = jax.random.PRNGKey(0)
    k1, k2, k3, k4 = jax.random.split(key, 4)

    # Primary case: [B, C, W, H] = [2, 4, 16, 16]
    B, C, W, H = 2, 4, 16, 16
    x = jax.nn.sigmoid(jax.random.normal(k1, (B, C, W, H), dtype=jnp.float32))
    y = (jax.random.uniform(k2, (B, C, W, H)) > 0.5).astype(jnp.float32)
    out = jax.block_until_ready(active_contour(x, y))
    ref = active_contour_ref(x, y)
    assert jnp.allclose(out, ref, rtol=1e-5, atol=1e-5), (out, ref)

    # Secondary case: awkward B*C (row padding path) and non-power-of-two H.
    B2, C2, W2, H2 = 3, 1, 10, 10
    x2 = jax.nn.sigmoid(jax.random.normal(k3, (B2, C2, W2, H2), dtype=jnp.float32))
    y2 = (jax.random.uniform(k4, (B2, C2, W2, H2)) > 0.5).astype(jnp.float32)
    out2 = jax.block_until_ready(active_contour(x2, y2))
    ref2 = active_contour_ref(x2, y2)
    assert jnp.allclose(out2, ref2, rtol=1e-5, atol=1e-5), (out2, ref2)

    print("KERNEL_OK")
</pallas_src>

<mosaic_0001>
module attributes {stable_mosaic.version = 11 : i64} {
  func.func @_active_contour_kernel(%arg0: i32, %arg1: memref<1x256xf32, #tpu.memory_space<vmem>>, %arg2: memref<8x256xf32, #tpu.memory_space<vmem>>, %arg3: memref<8x256xf32, #tpu.memory_space<vmem>>, %arg4: memref<1x1x256xf32, #tpu.memory_space<vmem>>, %arg5: memref<1x1x256xf32, #tpu.memory_space<vmem>>) attributes {dimension_semantics = [#tpu.dimension_semantics<parallel>], iteration_bounds = array<i64: 1>, scalar_prefetch = 0 : i64, scratch_operands = 0 : i64, tpu.core_type = #tpu.core_type<tc>, window_params = [{pipeline_mode = #tpu.pipeline_mode<synchronous>, transform_indices = @transform_0, window_bounds = array<i64: 1, 256>}, {transform_indices = @transform_1, window_bounds = array<i64: 8, 256>}, {transform_indices = @transform_2, window_bounds = array<i64: 8, 256>}, {transform_indices = @transform_3, window_bounds = array<i64: 1, 1, 256>}, {transform_indices = @transform_4, window_bounds = array<i64: 1, 1, 256>}]} {
    %c0 = arith.constant 0 : index
    %c0_0 = arith.constant 0 : index
    %0 = vector.load %arg2[%c0, %c0_0] : memref<8x256xf32, #tpu.memory_space<vmem>>, vector<8x256xf32>
    %c0_1 = arith.constant 0 : index
    %c0_2 = arith.constant 0 : index
    %1 = vector.load %arg3[%c0_1, %c0_2] : memref<8x256xf32, #tpu.memory_space<vmem>>, vector<8x256xf32>
    %c0_3 = arith.constant 0 : index
    %c0_4 = arith.constant 0 : index
    %2 = vector.load %arg1[%c0_3, %c0_4] : memref<1x256xf32, #tpu.memory_space<vmem>>, vector<1x256xf32>
    %3 = arith.mulf %0, %0 : vector<8x256xf32>
    %cst = arith.constant 2.000000e+00 : f32
    %4 = vector.broadcast %cst : f32 to vector<8x256xf32>
    %5 = arith.mulf %4, %0 : vector<8x256xf32>
    %6 = arith.mulf %5, %1 : vector<8x256xf32>
    %7 = arith.subf %3, %6 : vector<8x256xf32>
    %8 = arith.addf %7, %1 : vector<8x256xf32>
    %c240_i32 = arith.constant 240 : i32
    %9 = tpu.dynamic_rotate %0 by %c240_i32 dim 1 : vector<8x256xf32>, i32 -> vector<8x256xf32>
    %c224_i32 = arith.constant 224 : i32
    %10 = tpu.dynamic_rotate %0 by %c224_i32 dim 1 : vector<8x256xf32>, i32 -> vector<8x256xf32>
    %c255_i32 = arith.constant 255 : i32
    %11 = tpu.dynamic_rotate %0 by %c255_i32 dim 1 : vector<8x256xf32>, i32 -> vector<8x256xf32>
    %c254_i32 = arith.constant 254 : i32
    %12 = tpu.dynamic_rotate %0 by %c254_i32 dim 1 : vector<8x256xf32>, i32 -> vector<8x256xf32>
    %13 = arith.subf %10, %9 : vector<8x256xf32>
    %14 = arith.mulf %13, %13 : vector<8x256xf32>
    %15 = arith.subf %12, %11 : vector<8x256xf32>
    %16 = arith.mulf %15, %15 : vector<8x256xf32>
    %17 = arith.addf %14, %16 : vector<8x256xf32>
    %cst_5 = arith.constant 9.99999997E-7 : f32
    %18 = vector.broadcast %cst_5 : f32 to vector<8x256xf32>
    %19 = arith.addf %17, %18 : vector<8x256xf32>
    %20 = math.sqrt %19 : vector<8x256xf32>
    %21 = vector.broadcast %2 : vector<1x256xf32> to vector<8x256xf32>
    %22 = arith.mulf %20, %21 : vector<8x256xf32>
    %cst_6 = arith.constant dense<0.000000e+00> : vector<256xf32>
    %23 = vector.multi_reduction <add>, %22, %cst_6 [0] : vector<8x256xf32> to vector<256xf32>
    %24 = vector.shape_cast %23 : vector<256xf32> to vector<1x256xf32>
    %25 = vector.shape_cast %24 : vector<1x256xf32> to vector<1x1x256xf32>
    %c0_7 = arith.constant 0 : index
    %c0_8 = arith.constant 0 : index
    %c0_9 = arith.constant 0 : index
    %26 = vector.load %arg4[%c0_7, %c0_8, %c0_9] : memref<1x1x256xf32, #tpu.memory_space<vmem>>, vector<1x1x256xf32>
    tpu.vector_store %arg4[%c0_7, %c0_8, %c0_9], %25 {strides = array<i32>} : memref<1x1x256xf32, #tpu.memory_space<vmem>>, vector<1x1x256xf32>,
    %cst_10 = arith.constant dense<0.000000e+00> : vector<256xf32>
    %27 = vector.multi_reduction <add>, %8, %cst_10 [0] : vector<8x256xf32> to vector<256xf32>
    %28 = vector.shape_cast %27 : vector<256xf32> to vector<1x256xf32>
    %29 = vector.shape_cast %28 : vector<1x256xf32> to vector<1x1x256xf32>
    %c0_11 = arith.constant 0 : index
    %c0_12 = arith.constant 0 : index
    %c0_13 = arith.constant 0 : index
    %30 = vector.load %arg5[%c0_11, %c0_12, %c0_13] : memref<1x1x256xf32, #tpu.memory_space<vmem>>, vector<1x1x256xf32>
    tpu.vector_store %arg5[%c0_11, %c0_12, %c0_13], %29 {strides = array<i32>} : memref<1x1x256xf32, #tpu.memory_space<vmem>>, vector<1x1x256xf32>,
    return
  }
  func.func @transform_0(%arg0: i32) -> (i32, i32) {
    %c0_i32 = arith.constant 0 : i32
    %c0_i32_0 = arith.constant 0 : i32
    %c0_i32_1 = arith.constant 0 : i32
    return %c0_i32, %c0_i32_0 : i32, i32
  }
  func.func @transform_1(%arg0: i32) -> (i32, i32) {
    %c0_i32 = arith.constant 0 : i32
    %c0_i32_0 = arith.constant 0 : i32
    return %arg0, %c0_i32 : i32, i32
  }
  func.func @transform_2(%arg0: i32) -> (i32, i32) {
    %c0_i32 = arith.constant 0 : i32
    %c0_i32_0 = arith.constant 0 : i32
    return %arg0, %c0_i32 : i32, i32
  }
  func.func @transform_3(%arg0: i32) -> (i32, i32, i32) {
    %c0_i32 = arith.constant 0 : i32
    %c0_i32_0 = arith.constant 0 : i32
    %c0_i32_1 = arith.constant 0 : i32
    return %arg0, %c0_i32, %c0_i32_0 : i32, i32, i32
  }
  func.func @transform_4(%arg0: i32) -> (i32, i32, i32) {
    %c0_i32 = arith.constant 0 : i32
    %c0_i32_0 = arith.constant 0 : i32
    %c0_i32_1 = arith.constant 0 : i32
    return %arg0, %c0_i32, %c0_i32_0 : i32, i32, i32
  }
}

</mosaic_0001>

<bundles_post_ra>
// kernel: tpu_custom_call.1
= control target key start
LH: loop header
LB: loop body
LE: loop exit
PB: predicated region body
PF: predicated region fallthrough
CT: control target
= control target key end

     0   :  { %10 = vsyncpa [#allocation3], 0  ;;  %s424_s0 = inlined_call_operand.hbm [shape: f32[1,256], index: 0, kind: input, shape index: {}]   ;;  %s425_s1 = inlined_call_operand.hbm [shape: f32[8,256], index: 1, kind: input, shape index: {}]   ;;  %s426_s2 = inlined_call_operand.hbm [shape: f32[8,256], index: 2, kind: input, shape index: {}]   ;;  %s427_s3 = inlined_call_operand.hbm [shape: f32[1,1,256], index: 3, kind: output, shape index: {0}]   ;;  %s428_s4 = inlined_call_operand.hbm [shape: f32[1,1,256], index: 4, kind: output, shape index: {1}]  }
   0x1   :  { %11 = vsyncpa [#allocation6], 0 }
   0x2   :  { %12 = vsyncpa [#allocation4], 0 }
   0x3   :  { %13 = vsyncpa [#allocation10], 0  ;;  %s355_s15 = smov [#allocation5]   ;;  %s356_s17 = smov [#allocation2]  }
   0x4   :  { %s30_s16 = sshll.u32 %s355_s15, 4  ;;  %s20_s18 = sshll.u32 %s356_s17, 4  ;;  %s31_s16 = int_to_ptr.vmem [resolvable:$true] %s30_s16  ;;  %s21_s18 = int_to_ptr.vmem [resolvable:$true] %s20_s18 }
   0x5   :  { %s255_s19 = scalar_lea.vmem %s31_s16, 256  ;;  %p260_p1 = scmp.lt.s32.totalorder %s31_s16, %s31_s16 }
   0x6   :  { %p256_p0 = scmp.ne.s32.totalorder %s31_s16, %s255_s19  ;;  %p261_p2 = scmp.lt.s32.totalorder %s255_s19, %s255_s19 }
   0x8   :  { %p262_p3 = por %p261_p2, %p260_p1 }
   0xa   :  { %p263_p4 = pnand %p262_p3, %p256_p0 }
   0xc   :  { %266 = shalt.err (!%p263_p4)
}
   0xd   :  { %33 = dma.hbm_to_vmem [thread:$0]  %s425_s1, 256, %s31_s16, [#allocation6]  }
   0xe   :  { %s275_s22 = scalar_lea.vmem %s21_s18, 32  ;;  %p280_p6 = scmp.lt.s32.totalorder %s21_s18, %s21_s18 }
   0xf   :  { %p276_p5 = scmp.ne.s32.totalorder %s21_s18, %s275_s22  ;;  %p281_p7 = scmp.lt.s32.totalorder %s275_s22, %s275_s22 }
  0x11   :  { %p282_p8 = por %p281_p7, %p280_p6 }
  0x13   :  { %p283_p9 = pnand %p282_p8, %p276_p5 }
  0x15   :  { %286 = shalt.err (!%p283_p9)
}
  0x16   :  { %23 = dma.hbm_to_vmem [thread:$0]  %s424_s0, 32, %s21_s18, [#allocation3]  }
  0x17   :  { %s357_s25 = smov [#allocation7]  }
  0x18   :  { %s40_s26 = sshll.u32 %s357_s25, 4  ;;  %s41_s26 = int_to_ptr.vmem [resolvable:$true] %s40_s26 }
  0x19   :  { %s295_s27 = scalar_lea.vmem %s41_s26, 256  ;;  %p300_p11 = scmp.lt.s32.totalorder %s41_s26, %s41_s26 }
  0x1a   :  { %p296_p10 = scmp.ne.s32.totalorder %s41_s26, %s295_s27  ;;  %p301_p12 = scmp.lt.s32.totalorder %s295_s27, %s295_s27 }
  0x1c   :  { %p302_p13 = por %p301_p12, %p300_p11 }
  0x1e   :  { %p303_p0 = pnand %p302_p13, %p296_p10 }
  0x20   :  { %306 = shalt.err (!%p303_p0)
}
  0x21   :  { %43 = dma.hbm_to_vmem [thread:$0]  %s426_s2, 256, %s41_s26, [#allocation6]  }
  0x22   :  { %347 = dma.done.wait [#allocation3], 32  }
  0x23   :  { %348 = vsyncadd [#allocation3], 4294967264 }
  0x24   :  { %349 = dma.done.wait [#allocation6], 512  }
  0x25   :  { %350 = vsyncadd [#allocation6], 4294966784  ;;  %v53_v0 = vld [vmem:[#allocation5] sm:$0xff]  ;;  %s358_s0 = smov 96   ;;  %s359_s29 = smov 112   ;;  %v54_v1 = vld [vmem:[#allocation5 + $0x8] sm:$0xff]  ;;  %v72_v22 = vlaneseq }
  0x26   :  { %77 = vrot.lane.b32.xlu1 %v53_v0, %s358_s0  ;;  %68 = vrot.lane.b32.xlu0 %v53_v0, %s359_s29  ;;  %s360_s30 = smov 127   ;;  %s361_s5 = smov 126   ;;  %v60_v2 = vmul.f32 2.0, %v53_v0  ;;  %v61_v3 = vmul.f32 2.0, %v54_v1  ;;  %v58_v4 = vmul.f32 %v53_v0, %v53_v0  ;;  %v59_v5 = vmul.f32 %v54_v1, %v54_v1  ;;  %v55_v6 = vld [vmem:[#allocation7] sm:$0xff]  ;;  %v56_v7 = vld [vmem:[#allocation7 + $0x8] sm:$0xff] }
  0x27   :  { %v362_v23 = vmov 1966171168   ;;  %v399_v27 = vshrl.u32 %v72_v22, 7  ;;  %vm405_vm0 = vcmp.lt.s32.totalorder %v72_v22, 256  ;;  %s363_s2 = smov [#allocation9]  }
  0x28   :  { %v62_v8 = vmul.f32 %v60_v2, %v55_v6  ;;  %v63_v9 = vmul.f32 %v61_v3, %v56_v7  ;;  %v153_v24 = vunpack.c.l.s4 %v362_v23  ;;  %s219_s6 = sshll.u32 %s363_s2, 4  ;;  %s220_s6 = int_to_ptr.vmem [resolvable:$true] %s219_s6 }
  0x29   :  { %s307_s7 = scalar_lea.vmem %s220_s6, 32  ;;  %p312_p2 = scmp.lt.s32.totalorder %s220_s6, %s220_s6 }
  0x2a   :  { %79 = vrot.lane.b32.xlu1 %v54_v1, %s358_s0  ;;  %70 = vrot.lane.b32.xlu0 %v54_v1, %s359_s29  ;;  %v64_v10 = vsub.f32 %v58_v4, %v62_v8  ;;  %v65_v11 = vsub.f32 %v59_v5, %v63_v9  ;;  %v154_v28 = vunpack.c.0.s8 %v153_v24  ;;  %p308_p1 = scmp.ne.s32.totalorder %s220_s6, %s307_s7  ;;  %p313_p3 = scmp.lt.s32.totalorder %s307_s7, %s307_s7 }
  0x2c   :  { %v66_v12 = vadd.f32 %v64_v10, %v55_v6  ;;  %v67_v13 = vadd.f32 %v65_v11, %v56_v7  ;;  %v402_v31 = vsub.s32 %v154_v28, %v399_v27  ;;  %p314_p4 = por %p313_p3, %p312_p2 }
  0x2e   :  { %86 = vrot.lane.b32.xlu1 %v54_v1, %s360_s30  ;;  %84 = vrot.lane.b32.xlu0 %v53_v0, %s360_s30  ;;  %v172_v14 = vrot.slane %v66_v12, 4  ;;  %v178_v15 = vrot.slane %v67_v13, 4  ;;  %p315_p5 = pnand %p314_p4, %p308_p1 }
  0x30   :  { %v173_v16 = vadd.f32 %v172_v14, %v66_v12  ;;  %v179_v17 = vadd.f32 %v178_v15, %v67_v13 }
  0x32   :  { %93 = vrot.lane.b32.xlu1 %v54_v1, %s361_s5  ;;  %91 = vrot.lane.b32.xlu0 %v53_v0, %s361_s5  ;;  %v174_v18 = vrot.slane %v173_v16, 2  ;;  %v180_v19 = vrot.slane %v179_v17, 2 }
  0x34   :  { %v175_v20 = vadd.f32 %v174_v18, %v173_v16  ;;  %v181_v21 = vadd.f32 %v180_v19, %v179_v17 }
  0x36   :  { %v176_v25 = vrot.slane %v175_v20, 1  ;;  %v182_v26 = vrot.slane %v181_v21, 1 }
  0x38   :  { %v177_v29 = vadd.f32 %v176_v25, %v175_v20  ;;  %v183_v30 = vadd.f32 %v182_v26, %v181_v21 }
  0x3a   :  { %v186_v32 = vcombine.low %v177_v29, %v183_v30 }
  0x3c   :  { %v193_v33 = vrot.slane %v186_v32, %v402_v31 }
  0x3e   :  { %v200_v35 = vrot.slane %v193_v33, %v402_v31 }
  0x40   :  { %202 = vst.msk [vmem:[#allocation9] sm:$0x3] %vm405_vm0, %v200_v35 }
  0x41   :  { %318 = shalt.err (!%p315_p5)
}
  0x42   :  { %222 = dma.vmem_to_hbm [thread:$0]  %s220_s6, 32, %s428_s4, [#allocation10]   ;;  %v73_v38 = vand.u32 127, %v72_v22  ;;  %v127_v1 = vsub.s32 0, %v399_v27  ;;  %v57_v2 = vld [vmem:[#allocation2] sm:$0x3] }
  0x43   :  { %v131_v3 = vsub.s32 1, %v399_v27  ;;  %s364_s4 = smov [#allocation8]  }
  0x44   :  { %vm81_vm1 = vcmp.lt.s32.totalorder %v73_v38, 96  ;;  %vm74_vm2 = vcmp.lt.s32.totalorder %v73_v38, 112  ;;  %vm88_vm3 = vcmp.lt.s32.totalorder %v73_v38, 127  ;;  %vm95_vm4 = vcmp.lt.s32.totalorder %v73_v38, 126  ;;  %s209_s10 = sshll.u32 %s364_s4, 4  ;;  %s210_s10 = int_to_ptr.vmem [resolvable:$true] %s209_s10 }
  0x45   :  { %v128_v7 = vrot.slane %v57_v2, %v127_v1  ;;  %v132_v10 = vrot.slane %v57_v2, %v131_v3  ;;  %s327_s11 = scalar_lea.vmem %s210_s10, 32  ;;  %p332_p7 = scmp.lt.s32.totalorder %s210_s10, %s210_s10 }
  0x46   :  { %p328_p6 = scmp.ne.s32.totalorder %s210_s10, %s327_s11  ;;  %p333_p8 = scmp.lt.s32.totalorder %s327_s11, %s327_s11 }
  0x48   :  { %p334_p9 = por %p333_p8, %p332_p7 }
  0x4a   :  { %p335_p10 = pnand %p334_p9, %p328_p6 }
  0x98   :  { %v78_v36 = vpop.permute.xlu1 %77  ;;  %v69_v37 = vpop.permute.xlu0 %68 }
  0x9c   :  { %v80_v39 = vpop.permute.xlu1 %79  ;;  %v71_v40 = vpop.permute.xlu0 %70 }
  0x9d   :  { %v82_v43 = vsel %vm81_vm1, %v78_v36, %v80_v39  ;;  %v83_v44 = vsel %vm81_vm1, %v80_v39, %v78_v36  ;;  %v75_v45 = vsel %vm74_vm2, %v69_v37, %v71_v40  ;;  %v76_v46 = vsel %vm74_vm2, %v71_v40, %v69_v37 }
  0x9e   :  { %v98_v47 = vsub.f32 %v82_v43, %v75_v45  ;;  %v99_v48 = vsub.f32 %v83_v44, %v76_v46 }
  0xa0   :  { %v87_v41 = vpop.permute.xlu1 %86  ;;  %v85_v42 = vpop.permute.xlu0 %84  ;;  %v100_v57 = vmul.f32 %v98_v47, %v98_v47  ;;  %v101_v58 = vmul.f32 %v99_v48, %v99_v48 }
  0xa1   :  { %v89_v51 = vsel %vm88_vm3, %v85_v42, %v87_v41  ;;  %v90_v52 = vsel %vm88_vm3, %v87_v41, %v85_v42 }
  0xa4   :  { %v94_v49 = vpop.permute.xlu1 %93  ;;  %v92_v50 = vpop.permute.xlu0 %91 }
  0xa5   :  { %v96_v53 = vsel %vm95_vm4, %v92_v50, %v94_v49  ;;  %v97_v54 = vsel %vm95_vm4, %v94_v49, %v92_v50 }
  0xa6   :  { %v102_v55 = vsub.f32 %v96_v53, %v89_v51  ;;  %v103_v56 = vsub.f32 %v97_v54, %v90_v52 }
  0xa8   :  { %v104_v59 = vmul.f32 %v102_v55, %v102_v55  ;;  %v105_v60 = vmul.f32 %v103_v56, %v103_v56 }
  0xaa   :  { %v106_v61 = vadd.f32 %v104_v59, %v100_v57  ;;  %v107_v62 = vadd.f32 %v105_v60, %v101_v58 }
  0xac   :  { %v108_v63 = vadd.f32 1e-06, %v106_v61  ;;  %v109_v0 = vadd.f32 1e-06, %v107_v62 }
  0xae   :  { %243 = vrsqrt.f32 %v108_v63  ;;  %vm112_vm5 = vcmp.eq.f32.partialorder %v108_v63, inf  ;;  %v115_v9 = vand.u32 2147483648, %v108_v63  ;;  %vm114_vm6 = vcmp.eq.f32.partialorder %v108_v63, 0.0 }
  0xaf   :  { %245 = vrsqrt.f32 %v109_v0  ;;  %vm119_vm7 = vcmp.eq.f32.partialorder %v109_v0, inf  ;;  %v122_v12 = vand.u32 2147483648, %v109_v0  ;;  %vm121_vm8 = vcmp.eq.f32.partialorder %v109_v0, 0.0 }
  0xbb   :  { %v244_v4 = vpop.eup %243 }
  0xbc   :  { %v246_v5 = vpop.eup %245  ;;  %v111_v6 = vmul.f32 %v244_v4, %v108_v63 }
  0xbd   :  { %v118_v8 = vmul.f32 %v246_v5, %v109_v0 }
  0xbe   :  { %v113_v11 = vsel %vm112_vm5, %v108_v63, %v111_v6 }
  0xbf   :  { %v116_v13 = vsel %vm114_vm6, %v115_v9, %v113_v11  ;;  %v120_v14 = vsel %vm119_vm7, %v109_v0, %v118_v8 }
  0xc0   :  { %v123_v15 = vsel %vm121_vm8, %v122_v12, %v120_v14  ;;  %v135_v16 = vmul.f32 %v128_v7, %v116_v13 }
  0xc1   :  { %v136_v17 = vmul.f32 %v132_v10, %v123_v15 }
  0xc2   :  { %v137_v18 = vrot.slane %v135_v16, 4 }
  0xc3   :  { %v143_v19 = vrot.slane %v136_v17, 4 }
  0xc4   :  { %v138_v20 = vadd.f32 %v137_v18, %v135_v16 }
  0xc5   :  { %v144_v21 = vadd.f32 %v143_v19, %v136_v17 }
  0xc6   :  { %v139_v22 = vrot.slane %v138_v20, 2 }
  0xc7   :  { %v145_v23 = vrot.slane %v144_v21, 2 }
  0xc8   :  { %v140_v24 = vadd.f32 %v139_v22, %v138_v20 }
  0xc9   :  { %v146_v25 = vadd.f32 %v145_v23, %v144_v21 }
  0xca   :  { %v141_v26 = vrot.slane %v140_v24, 1 }
  0xcb   :  { %v147_v27 = vrot.slane %v146_v25, 1 }
  0xcc   :  { %v142_v28 = vadd.f32 %v141_v26, %v140_v24 }
  0xcd   :  { %v148_v29 = vadd.f32 %v147_v27, %v146_v25 }
  0xcf   :  { %v151_v30 = vcombine.low %v142_v28, %v148_v29 }
  0xd1   :  { %v158_v32 = vrot.slane %v151_v30, %v402_v31 }
  0xd3   :  { %v165_v33 = vrot.slane %v158_v32, %v402_v31 }
  0xd5   :  { %171 = vst.msk [vmem:[#allocation8] sm:$0x3] %vm405_vm0, %v165_v33 }
  0xd6   :  { %338 = shalt.err (!%p335_p10)
}
  0xd7   :  { %212 = dma.vmem_to_hbm [thread:$0]  %s210_s10, 32, %s427_s3, [#allocation4]  }
  0xd8   :  { %351 = dma.done.wait [#allocation4], 32  }
  0xd9   :  { %352 = vsyncadd [#allocation4], 4294967264 }
  0xda   :  { %353 = dma.done.wait [#allocation10], 32  }
  0xdb   :  { %354 = vsyncadd [#allocation10], 4294967264 }
  0xdc   :  { %229 = vsyncpa [#allocation3], 1 }
  0xdd   :  { %230 = vsyncpa [#allocation6], 1 }
  0xde   :  { %231 = vsyncpa [#allocation4], 1 }
  0xdf   :  { %232 = vsyncpa [#allocation10], 1 }

</bundles_post_ra>
